<compile_context>
chip_gen: v7x
topology: tpu7x:2x2x1
jax: 0.10.0
libtpu: 0.0.40
codegen_flags: <defaults>
</compile_context>

<pallas_src>
import jax
import jax.numpy as jnp
from jax.experimental import pallas as pl
from jax.experimental.pallas import tpu as pltpu


def _round_up(n, m):
    return ((n + m - 1) // m) * m


def vpg_kernel(x_ref, w1_ref, w2_ref, w3_ref, b_ref, out_ref):
    hidden = w1_ref.shape[1]
    x = x_ref[...]
    in_dtype = x.dtype

    # Packed biases (kept in f32): row 0 = b1, row 1 = b2, row 2 = b3 (padded
    # action lanes hold -1e30 so they vanish in the softmax).
    b1 = b_ref[0:1, :hidden]
    b2 = b_ref[1:2, :hidden]
    b3 = b_ref[2:3, :]

    # Layer 1: Linear + ReLU (MXU matmul, f32 accumulation).
    h1 = jnp.dot(x, w1_ref[...], preferred_element_type=jnp.float32) + b1
    h1 = jnp.maximum(h1, 0.0).astype(in_dtype)

    # Layer 2: Linear + ReLU.
    h2 = jnp.dot(h1, w2_ref[...], preferred_element_type=jnp.float32) + b2
    h2 = jnp.maximum(h2, 0.0).astype(in_dtype)

    # Layer 3: Linear -> logits (lane-dense, 128-wide padded).
    logits = jnp.dot(h2, w3_ref[...], preferred_element_type=jnp.float32) + b3

    # Numerically stable softmax over the action axis.  Padded lanes carry
    # -1e30 logits -> exp() == 0, so they do not perturb the normalization.
    m = jnp.max(logits, axis=-1, keepdims=True)
    e = jnp.exp(logits - m)
    denom = jnp.sum(e, axis=-1, keepdims=True)
    probs = e * pl.reciprocal(denom, approx=False)

    out_ref[...] = probs.astype(out_ref.dtype)


def vpg_forward(x, params, action_space, *, tile_b=128, input_dtype=jnp.float32):
    """Fused MLP + softmax forward pass.

    x: (B, state_space) float32. Returns (B, action_space) float32 probs.
    """
    w1, b1, w2, b2, w3, b3 = params
    B, state_space = x.shape
    hidden = w1.shape[1]
    n_pad = _round_up(max(action_space, 128), 128)   # lane-dense output width

    # ---- parameter packing / padding (done once per call in the wrapper) ----
    w1c = w1.astype(input_dtype)
    w2c = w2.astype(input_dtype)
    w3p = jnp.zeros((hidden, n_pad), input_dtype).at[:, :action_space].set(
        w3.astype(input_dtype))
    b_pack = jnp.zeros((3, n_pad), jnp.float32)
    b_pack = b_pack.at[0, :hidden].set(b1.reshape(-1))
    b_pack = b_pack.at[1, :hidden].set(b2.reshape(-1))
    b_pack = b_pack.at[2, :].set(-1e30)                       # kill padded lanes
    b_pack = b_pack.at[2, :action_space].set(b3.reshape(-1))

    # ---- batch tiling (pad B up to a multiple of the tile) ----
    tile_b = min(tile_b, _round_up(B, 8))   # sublane-aligned, never > needed
    b_padded = _round_up(B, tile_b)
    xp = x.astype(input_dtype)
    if b_padded != B:
        xp = jnp.pad(xp, ((0, b_padded - B), (0, 0)))

    grid = (b_padded // tile_b,)

    out = pl.pallas_call(
        vpg_kernel,
        out_shape=jax.ShapeDtypeStruct((b_padded, n_pad), jnp.float32),
        grid=grid,
        in_specs=[
            pl.BlockSpec((tile_b, state_space), lambda i: (i, 0)),   # x: tiled over B
            pl.BlockSpec((state_space, hidden), lambda i: (0, 0)),   # w1: resident
            pl.BlockSpec((hidden, hidden), lambda i: (0, 0)),        # w2: resident
            pl.BlockSpec((hidden, n_pad), lambda i: (0, 0)),         # w3 (padded): resident
            pl.BlockSpec((3, n_pad), lambda i: (0, 0)),              # packed biases
        ],
        out_specs=pl.BlockSpec((tile_b, n_pad), lambda i: (i, 0)),
        compiler_params=pltpu.CompilerParams(
            dimension_semantics=("parallel",)),
    )(xp, w1c, w2c, w3p, b_pack)

    return out[:B, :action_space]


def init_params(key, state_space, hidden, action_space):
    """Deterministic init mimicking PyTorch Linear's uniform(-1/sqrt(fan_in), +)."""
    ks = jax.random.split(key, 6)

    def lin(kw, kb, fan_in, fan_out):
        bound = 1.0 / jnp.sqrt(jnp.float32(fan_in))
        w = jax.random.uniform(kw, (fan_in, fan_out), jnp.float32, -bound, bound)
        b = jax.random.uniform(kb, (1, fan_out), jnp.float32, -bound, bound)
        return w, b

    w1, b1 = lin(ks[0], ks[1], state_space, hidden)
    w2, b2 = lin(ks[2], ks[3], hidden, hidden)
    w3, b3 = lin(ks[4], ks[5], hidden, action_space)
    return (w1, b1, w2, b2, w3, b3)


def reference_forward(x, params):
    w1, b1, w2, b2, w3, b3 = params
    h1 = jnp.maximum(x @ w1 + b1, 0.0)
    h2 = jnp.maximum(h1 @ w2 + b2, 0.0)
    logits = h2 @ w3 + b3
    return jax.nn.softmax(logits, axis=-1)


if __name__ == "__main__":
    state_space, hidden, action_space = 4, 64, 2

    key = jax.random.PRNGKey(0)
    k_params, k_x1, k_x2 = jax.random.split(key, 3)
    params = init_params(k_params, state_space, hidden, action_space)

    # (1) Small / ragged batch (exercises the padding + partial-tile path).
    x_small = jax.random.normal(k_x1, (5, state_space), dtype=jnp.float32)
    p_small = jax.block_until_ready(vpg_forward(x_small, params, action_space))
    ref_small = reference_forward(x_small, params)
    assert p_small.shape == (5, action_space)
    assert jnp.allclose(p_small, ref_small, atol=1e-5, rtol=1e-5)
    assert jnp.allclose(jnp.sum(p_small, axis=-1), 1.0, atol=1e-5)

    # (2) Batched-rollout shape: multi-tile batch grid, f32.
    x_big = jax.random.normal(k_x2, (256, state_space), dtype=jnp.float32)
    p_big = jax.block_until_ready(
        vpg_forward(x_big, params, action_space, tile_b=128))
    ref_big = reference_forward(x_big, params)
    assert p_big.shape == (256, action_space)
    assert jnp.allclose(p_big, ref_big, atol=1e-5, rtol=1e-5)
    assert jnp.allclose(jnp.sum(p_big, axis=-1), 1.0, atol=1e-5)

    # (3) bf16 input/weight path (halves DMA bytes; f32 MXU accumulation).
    p_bf16 = jax.block_until_ready(
        vpg_forward(x_big, params, action_space, tile_b=128,
                    input_dtype=jnp.bfloat16))
    assert p_bf16.shape == (256, action_space)
    assert jnp.allclose(p_bf16, ref_big, atol=3e-2)
    assert jnp.allclose(jnp.sum(p_bf16, axis=-1), 1.0, atol=1e-3)

    # TODO(synk): optimizer (Adam) and SmoothL1Loss are training-side and are
    # intentionally not part of this forward-pass kernel.
    print("KERNEL_OK")
</pallas_src>

<mosaic_0001>
module attributes {stable_mosaic.version = 11 : i64} {
  func.func @vpg_kernel(%arg0: i32, %arg1: memref<8x4xf32, #tpu.memory_space<vmem>>, %arg2: memref<4x64xf32, #tpu.memory_space<vmem>>, %arg3: memref<64x64xf32, #tpu.memory_space<vmem>>, %arg4: memref<64x128xf32, #tpu.memory_space<vmem>>, %arg5: memref<3x128xf32, #tpu.memory_space<vmem>>, %arg6: memref<8x128xf32, #tpu.memory_space<vmem>>) attributes {dimension_semantics = [#tpu.dimension_semantics<parallel>], iteration_bounds = array<i64: 1>, scalar_prefetch = 0 : i64, scratch_operands = 0 : i64, tpu.core_type = #tpu.core_type<tc>, window_params = [{transform_indices = @transform_0, window_bounds = array<i64: 8, 4>}, {pipeline_mode = #tpu.pipeline_mode<synchronous>, transform_indices = @transform_1, window_bounds = array<i64: 4, 64>}, {pipeline_mode = #tpu.pipeline_mode<synchronous>, transform_indices = @transform_2, window_bounds = array<i64: 64, 64>}, {pipeline_mode = #tpu.pipeline_mode<synchronous>, transform_indices = @transform_3, window_bounds = array<i64: 64, 128>}, {pipeline_mode = #tpu.pipeline_mode<synchronous>, transform_indices = @transform_4, window_bounds = array<i64: 3, 128>}, {transform_indices = @transform_5, window_bounds = array<i64: 8, 128>}]} {
    %c0 = arith.constant 0 : index
    %c0_0 = arith.constant 0 : index
    %0 = vector.load %arg1[%c0, %c0_0] : memref<8x4xf32, #tpu.memory_space<vmem>>, vector<8x4xf32>
    %c0_1 = arith.constant 0 : index
    %c0_2 = arith.constant 0 : index
    %1 = vector.load %arg5[%c0_1, %c0_2] : memref<3x128xf32, #tpu.memory_space<vmem>>, vector<1x64xf32>
    %c1 = arith.constant 1 : index
    %c0_3 = arith.constant 0 : index
    %2 = vector.load %arg5[%c1, %c0_3] : memref<3x128xf32, #tpu.memory_space<vmem>>, vector<1x64xf32>
    %c2 = arith.constant 2 : index
    %c0_4 = arith.constant 0 : index
    %3 = vector.load %arg5[%c2, %c0_4] : memref<3x128xf32, #tpu.memory_space<vmem>>, vector<1x128xf32>
    %c0_5 = arith.constant 0 : index
    %c0_6 = arith.constant 0 : index
    %4 = vector.load %arg2[%c0_5, %c0_6] : memref<4x64xf32, #tpu.memory_space<vmem>>, vector<4x64xf32>
    %cst = arith.constant dense<0.000000e+00> : vector<8x64xf32>
    %5 = tpu.matmul %0, %4, %cst {dimension_numbers = #tpu.dot_dimension_numbers<[1], [0], [0], [1], [0, 0, 1, 1], [], []>} : vector<8x4xf32>, vector<4x64xf32>, vector<8x64xf32> -> vector<8x64xf32>
    %6 = vector.broadcast %1 : vector<1x64xf32> to vector<8x64xf32>
    %7 = arith.addf %5, %6 : vector<8x64xf32>
    %cst_7 = arith.constant 0.000000e+00 : f32
    %8 = vector.broadcast %cst_7 : f32 to vector<8x64xf32>
    %9 = arith.maximumf %7, %8 : vector<8x64xf32>
    %c0_8 = arith.constant 0 : index
    %c0_9 = arith.constant 0 : index
    %10 = vector.load %arg3[%c0_8, %c0_9] : memref<64x64xf32, #tpu.memory_space<vmem>>, vector<64x64xf32>
    %cst_10 = arith.constant dense<0.000000e+00> : vector<8x64xf32>
    %11 = tpu.matmul %9, %10, %cst_10 {dimension_numbers = #tpu.dot_dimension_numbers<[1], [0], [0], [1], [0, 0, 1, 1], [], []>} : vector<8x64xf32>, vector<64x64xf32>, vector<8x64xf32> -> vector<8x64xf32>
    %12 = vector.broadcast %2 : vector<1x64xf32> to vector<8x64xf32>
    %13 = arith.addf %11, %12 : vector<8x64xf32>
    %cst_11 = arith.constant 0.000000e+00 : f32
    %14 = vector.broadcast %cst_11 : f32 to vector<8x64xf32>
    %15 = arith.maximumf %13, %14 : vector<8x64xf32>
    %c0_12 = arith.constant 0 : index
    %c0_13 = arith.constant 0 : index
    %16 = vector.load %arg4[%c0_12, %c0_13] : memref<64x128xf32, #tpu.memory_space<vmem>>, vector<64x128xf32>
    %cst_14 = arith.constant dense<0.000000e+00> : vector<8x128xf32>
    %17 = tpu.matmul %15, %16, %cst_14 {dimension_numbers = #tpu.dot_dimension_numbers<[1], [0], [0], [1], [0, 0, 1, 1], [], []>} : vector<8x64xf32>, vector<64x128xf32>, vector<8x128xf32> -> vector<8x128xf32>
    %18 = vector.broadcast %3 : vector<1x128xf32> to vector<8x128xf32>
    %19 = arith.addf %17, %18 : vector<8x128xf32>
    %cst_15 = arith.constant dense<0xFF800000> : vector<8xf32>
    %20 = vector.multi_reduction <maximumf>, %19, %cst_15 [1] : vector<8x128xf32> to vector<8xf32>
    %21 = vector.shape_cast %20 : vector<8xf32> to vector<8x1xf32>
    %22 = vector.broadcast %21 : vector<8x1xf32> to vector<8x128xf32>
    %23 = arith.subf %19, %22 : vector<8x128xf32>
    %24 = math.exp %23 : vector<8x128xf32>
    %cst_16 = arith.constant dense<0.000000e+00> : vector<8xf32>
    %25 = vector.multi_reduction <add>, %24, %cst_16 [1] : vector<8x128xf32> to vector<8xf32>
    %26 = vector.shape_cast %25 : vector<8xf32> to vector<8x1xf32>
    %27 = tpu.reciprocal %26 : vector<8x1xf32> -> vector<8x1xf32>
    %28 = vector.broadcast %27 : vector<8x1xf32> to vector<8x128xf32>
    %29 = arith.mulf %24, %28 : vector<8x128xf32>
    %c0_17 = arith.constant 0 : index
    %c0_18 = arith.constant 0 : index
    %30 = vector.load %arg6[%c0_17, %c0_18] : memref<8x128xf32, #tpu.memory_space<vmem>>, vector<8x128xf32>
    tpu.vector_store %arg6[%c0_17, %c0_18], %29 {strides = array<i32>} : memref<8x128xf32, #tpu.memory_space<vmem>>, vector<8x128xf32>,
    return
  }
  func.func @transform_0(%arg0: i32) -> (i32, i32) {
    %c0_i32 = arith.constant 0 : i32
    %c0_i32_0 = arith.constant 0 : i32
    return %arg0, %c0_i32 : i32, i32
  }
  func.func @transform_1(%arg0: i32) -> (i32, i32) {
    %c0_i32 = arith.constant 0 : i32
    %c0_i32_0 = arith.constant 0 : i32
    %c0_i32_1 = arith.constant 0 : i32
    return %c0_i32, %c0_i32_0 : i32, i32
  }
  func.func @transform_2(%arg0: i32) -> (i32, i32) {
    %c0_i32 = arith.constant 0 : i32
    %c0_i32_0 = arith.constant 0 : i32
    %c0_i32_1 = arith.constant 0 : i32
    return %c0_i32, %c0_i32_0 : i32, i32
  }
  func.func @transform_3(%arg0: i32) -> (i32, i32) {
    %c0_i32 = arith.constant 0 : i32
    %c0_i32_0 = arith.constant 0 : i32
    %c0_i32_1 = arith.constant 0 : i32
    return %c0_i32, %c0_i32_0 : i32, i32
  }
  func.func @transform_4(%arg0: i32) -> (i32, i32) {
    %c0_i32 = arith.constant 0 : i32
    %c0_i32_0 = arith.constant 0 : i32
    %c0_i32_1 = arith.constant 0 : i32
    return %c0_i32, %c0_i32_0 : i32, i32
  }
  func.func @transform_5(%arg0: i32) -> (i32, i32) {
    %c0_i32 = arith.constant 0 : i32
    %c0_i32_0 = arith.constant 0 : i32
    return %arg0, %c0_i32 : i32, i32
  }
}

</mosaic_0001>

<bundles_post_ra>
// kernel: tpu_custom_call.1
= control target key start
LH: loop header
LB: loop body
LE: loop exit
PB: predicated region body
PF: predicated region fallthrough
CT: control target
= control target key end

     0   :  { %10 = vsyncpa [#allocation3], 0  ;;  %s605_s0 = inlined_call_operand.vmem [shape: f32[8,4], index: 0, kind: input, shape index: {}]   ;;  %s606_s1 = inlined_call_operand.vmem [shape: f32[4,64], index: 1, kind: input, shape index: {}]   ;;  %s607_s2 = inlined_call_operand.hbm [shape: f32[64,64], index: 2, kind: input, shape index: {}]   ;;  %s608_s3 = inlined_call_operand.hbm [shape: f32[64,128], index: 3, kind: input, shape index: {}]   ;;  %s609_s4 = inlined_call_operand.vmem [shape: f32[3,128], index: 4, kind: input, shape index: {}]   ;;  %s610_s5 = inlined_call_operand.hbm [shape: f32[8,128], index: 5, kind: output, shape index: {}]  }
   0x1   :  { %11 = vsyncpa [#allocation6], 0 }
   0x2   :  { %12 = vsyncpa [#allocation4], 0  ;;  %s513_s18 = smov [#allocation2]   ;;  %s441_s22 = scalar_lea.hbm %s607_s2, 1024 }
   0x3   :  { %s22_s19 = sshll.u32 %s513_s18, 4  ;;  %p442_p0 = scmp.ne.s32.totalorder %s607_s2, %s441_s22  ;;  %s23_s19 = int_to_ptr.vmem [resolvable:$true] %s22_s19 }
   0x4   :  { %p445_p1 = scmp.lt.u32.totalorder %s441_s22, %s607_s2 }
   0x6   :  { %p447_p2 = pnand %p445_p1, %p442_p0 }
   0x8   :  { %450 = shalt.err (!%p447_p2)
}
   0x9   :  { %s451_s27 = scalar_lea.vmem %s23_s19, 1024  ;;  %p456_p4 = scmp.lt.s32.totalorder %s23_s19, %s23_s19 }
   0xa   :  { %p452_p3 = scmp.ne.s32.totalorder %s23_s19, %s451_s27  ;;  %p457_p5 = scmp.lt.s32.totalorder %s451_s27, %s451_s27 }
   0xc   :  { %p458_p6 = por %p457_p5, %p456_p4 }
   0xe   :  { %p459_p7 = pnand %p458_p6, %p452_p3 }
  0x10   :  { %462 = shalt.err (!%p459_p7)
}
  0x11   :  { %s514_s28 = smov 128   ;;  %s515_s29 = smov 8  }
  0x12   :  { %28 = dma.hbm_to_vmem [thread:$0]  %s607_s2, 1024, %s23_s19, [#allocation3], %s514_s28, %s514_s28, %s515_s29  }
  0x13   :  { %s516_s7 = smov [#allocation5]   ;;  %s463_s11 = scalar_lea.hbm %s608_s3, 1024 }
  0x14   :  { %s34_s8 = sshll.u32 %s516_s7, 4  ;;  %p464_p8 = scmp.ne.s32.totalorder %s608_s3, %s463_s11  ;;  %s35_s8 = int_to_ptr.vmem [resolvable:$true] %s34_s8 }
  0x15   :  { %p467_p9 = scmp.lt.u32.totalorder %s463_s11, %s608_s3 }
  0x17   :  { %p469_p10 = pnand %p467_p9, %p464_p8 }
  0x19   :  { %472 = shalt.err (!%p469_p10)
}
  0x1a   :  { %s473_s16 = scalar_lea.vmem %s35_s8, 1024  ;;  %p478_p12 = scmp.lt.s32.totalorder %s35_s8, %s35_s8 }
  0x1b   :  { %p474_p11 = scmp.ne.s32.totalorder %s35_s8, %s473_s16  ;;  %p479_p13 = scmp.lt.s32.totalorder %s473_s16, %s473_s16 }
  0x1d   :  { %p480_p0 = por %p479_p13, %p478_p12 }
  0x1f   :  { %p481_p1 = pnand %p480_p0, %p474_p11 }
  0x21   :  { %484 = shalt.err (!%p481_p1)
}
  0x22   :  { %40 = dma.hbm_to_vmem [thread:$0]  %s608_s3, 1024, %s35_s8, [#allocation6], %s514_s28, %s514_s28, %s515_s29  }
  0x23   :  { %507 = dma.done.wait [#allocation3], 1024  }
  0x24   :  { %508 = vsyncadd [#allocation3], 4294966272 }
  0x25   :  { %509 = dma.done.wait [#allocation6], 1024  }
  0x26   :  { %510 = vsyncadd [#allocation6], 4294966272  ;;  %v517_v0 = vmov 0.0   ;;  %vm518_vm0 = vmmov 0   ;;  %v519_v1 = vmov 0.0|0.0   ;;  %vm62_vm1 = vcmask 1043456  }
  0x27   :  { %362 = vmatprep.subr.mxu0 %v517_v0  ;;  %364 = vmatprep.mubr.msk.f32.mxu0 %vm518_vm0, %v517_v0  ;;  %vm58_vm2 = vcmask 31744   ;;  %v53_v2 = vld [vmem:[%s606_s1] sm:$0xf]  ;;  %v138_v5 = vld [vmem:[#allocation2 + $0x8] sm:$0xff]  ;;  %v139_v6 = vld [vmem:[#allocation2 + $0x10] sm:$0xff]  ;;  %vm149_vm3 = vcmask 523264  }
  0x28   :  { %405 = vmatprep.subr.bf16.mxu1 %v519_v1  ;;  %383 = vmatprep.mubr.msk.f32.mxu1 %vm518_vm0, %v517_v0  ;;  %v49_v3 = vld [vmem:[%s605_s0] sm:$0xff]  ;;  %v140_v7 = vld [vmem:[#allocation2 + $0x18] sm:$0xff]  ;;  %v142_v11 = vld [vmem:[#allocation2 + $0x28] sm:$0xff]  ;;  %s520_s25 = smov [#allocation7]  }
  0x29   :  { %v137_v4 = vld [vmem:[#allocation2] sm:$0xff]  ;;  %363 = vmatpush3.msk.msra.mxu0 %vm62_vm1, %v53_v2  ;;  %v409_v9 = vpack.c.bf16 %v140_v7, %v139_v6  ;;  %v143_v13 = vld [vmem:[#allocation2 + $0x30] sm:$0xff]  ;;  %v144_v14 = vld [vmem:[#allocation2 + $0x38] sm:$0xff]  ;;  %s325_s26 = sshll.u32 %s520_s25, 4  ;;  %s326_s26 = int_to_ptr.vmem [resolvable:$true] %s325_s26 }
  0x2a   :  { %365 = vmatmul.mubr.msk.f32.vlgmr.msra.gmra.mrb[0].mxu0 %vm58_vm2, %v49_v3  ;;  %v406_v8 = vpack.c.bf16 %v138_v5, %v137_v4  ;;  %417 = vmatprep.subr.bf16.mxu0 %v519_v1  ;;  %v141_v10 = vld [vmem:[#allocation2 + $0x20] sm:$0xff]  ;;  %v415_v15 = vpack.c.bf16 %v144_v14, %v143_v13  ;;  %v225_v17 = vld [vmem:[#allocation5 + $0x8] sm:$0xff]  ;;  %v226_v18 = vld [vmem:[#allocation5 + $0x10] sm:$0xff]  ;;  %s485_s27 = scalar_lea.vmem %s326_s26, 128  ;;  %p490_p3 = scmp.lt.s32.totalorder %s326_s26, %s326_s26 }
  0x2b   :  { %402 = vmatprep.mubr.msk.f32.mxu0 %vm518_vm0, %v517_v0  ;;  %v412_v12 = vpack.c.bf16 %v142_v11, %v141_v10  ;;  %v224_v16 = vld [vmem:[#allocation5] sm:$0xff]  ;;  %v227_v20 = vld [vmem:[#allocation5 + $0x18] sm:$0xff]  ;;  %v229_v23 = vld [vmem:[#allocation5 + $0x28] sm:$0xff]  ;;  %p486_p2 = scmp.ne.s32.totalorder %s326_s26, %s485_s27  ;;  %p491_p4 = scmp.lt.s32.totalorder %s485_s27, %s485_s27 }
  0x2c   :  { %407 = vmatpush3.bf16.msra.mxu1 %v406_v8  ;;  %v418_v19 = vpack.c.bf16 %v225_v17, %v224_v16  ;;  %v421_v21 = vpack.c.bf16 %v227_v20, %v226_v18  ;;  %v228_v22 = vld [vmem:[#allocation5 + $0x20] sm:$0xff]  ;;  %v230_v30 = vld [vmem:[#allocation5 + $0x30] sm:$0xff]  ;;  %v231_v31 = vld [vmem:[#allocation5 + $0x38] sm:$0xff] }
  0x2d   :  { %408 = vmatprep.subr.bf16.mxu1 %v519_v1  ;;  %v424_v24 = vpack.c.bf16 %v229_v23, %v228_v22  ;;  %v335_v25 = vld [vmem:[%s609_s4] ss:$0 sm:$0xff]  ;;  %v427_v32 = vpack.c.bf16 %v231_v31, %v230_v30  ;;  %v338_v33 = vld [vmem:[%s609_s4 + $0x1] ss:$0 sm:$0xff]  ;;  %v340_v38 = vld [vmem:[%s609_s4 + $0x2] ss:$0 sm:$0xff]  ;;  %p492_p5 = por %p491_p4, %p490_p3 }
  0x2e   :  { %419 = vmatpush3.bf16.msra.mxu0 %v418_v19 }
  0x2f   :  { %420 = vmatprep.subr.bf16.mxu0 %v519_v1  ;;  %p493_p6 = pnand %p492_p5, %p486_p2 }
  0x30   :  { %410 = vmatpush3.bf16.msra.mxu1 %v409_v9 }
  0x31   :  { %411 = vmatprep.subr.bf16.mxu1 %v519_v1 }
  0x32   :  { %422 = vmatpush3.bf16.msra.mxu0 %v421_v21 }
  0x33   :  { %423 = vmatprep.subr.bf16.mxu0 %v519_v1 }
  0x34   :  { %413 = vmatpush3.bf16.msra.mxu1 %v412_v12 }
  0x35   :  { %414 = vmatprep.subr.bf16.mxu1 %v519_v1 }
  0x36   :  { %425 = vmatpush3.bf16.msra.mxu0 %v424_v24 }
  0x37   :  { %426 = vmatprep.subr.bf16.mxu0 %v519_v1 }
  0x38   :  { %416 = vmatpush3.bf16.msra.mxu1 %v415_v15 }
  0x3a   :  { %428 = vmatpush3.bf16.msra.mxu0 %v427_v32 }
  0xfd   :  { %v132_v26 = vpop.f32.mrb[0].mxu0 }
  0xfe   :  { %v133_v27 = vadd.f32 %v335_v25, %v132_v26  ;;  %v366_v28 = vpop.f32.mrb[1].mxu0 }
 0x100   :  { %v136_v29 = vmax.f32 %v133_v27, 0.0 }
 0x102   :  { %384 = vmatmul.mubr.msk.f32.vlgmr.msra.gmra.mrb[0].mxu1 %vm149_vm3, %v136_v29 }
 0x1d5   :  { %v219_v34 = vpop.f32.mrb[0].mxu1 }
 0x1d6   :  { %v220_v35 = vadd.f32 %v338_v33, %v219_v34  ;;  %v385_v36 = vpop.f32.mrb[1].mxu1 }
 0x1d8   :  { %v223_v37 = vmax.f32 %v220_v35, 0.0 }
 0x1da   :  { %403 = vmatmul.mubr.msk.f32.vlgmr.msra.gmra.mrb[2].mxu0 %vm149_vm3, %v223_v37 }
 0x2ad   :  { %v305_v39 = vpop.f32.mrb[2].mxu0 }
 0x2ae   :  { %v306_v40 = vadd.f32 %v340_v38, %v305_v39  ;;  %v404_v41 = vpop.f32.mrb[3].mxu0 }
 0x2b0   :  { %309 = vmax.xlane.f32.xlu0 %v306_v40 }
 0x33d   :  { %v310_v42 = vpop.xlane.xlu0 %309 }
 0x33e   :  { %v311_v43 = vsub.f32 %v306_v40, %v310_v42 }
 0x340   :  { %v312_v44 = vmul.f32 1.442695, %v311_v43 }
 0x342   :  { %437 = vpow2.f32 %v312_v44 }
 0x34c   :  { %v438_v45 = vpop.eup %437 }
 0x34d   :  { %314 = vadd.xlane.f32.xlu0 %v438_v45 }
 0x3da   :  { %v315_v46 = vpop.xlane.xlu0 %314 }
 0x3db   :  { %439 = vrcp.f32 %v315_v46 }
 0x3e5   :  { %v440_v47 = vpop.eup %439 }
 0x3e6   :  { %v317_v48 = vmul.f32 %v440_v47, %v438_v45 }
 0x3e8   :  { %318 = vst [vmem:[#allocation7] sm:$0xff] %v317_v48 }
 0x3e9   :  { %496 = shalt.err (!%p493_p6)
}
 0x3ea   :  { %s497_s29 = scalar_lea.hbm %s610_s5, 128 }
 0x3eb   :  { %p498_p7 = scmp.ne.s32.totalorder %s610_s5, %s497_s29  ;;  %p501_p8 = scmp.lt.u32.totalorder %s497_s29, %s610_s5 }
 0x3ed   :  { %p503_p9 = pnand %p501_p8, %p498_p7 }
 0x3ef   :  { %506 = shalt.err (!%p503_p9)
}
 0x3f0   :  { %328 = dma.vmem_to_hbm [thread:$0]  %s326_s26, 128, %s610_s5, [#allocation4]  }
 0x3f1   :  { %511 = dma.done.wait [#allocation4], 128  }
 0x3f2   :  { %512 = vsyncadd [#allocation4], 4294967168 }
 0x3f3   :  { %332 = vsyncpa [#allocation3], 1 }
 0x3f4   :  { %333 = vsyncpa [#allocation6], 1 }
 0x3f5   :  { %334 = vsyncpa [#allocation4], 1 }

</bundles_post_ra>
